<compile_context>
chip_gen: v5e
topology: v5e:2x2
jax: 0.10.0
libtpu: 0.0.40
codegen_flags: <defaults>
</compile_context>

<pallas_src>
import jax
import jax.numpy as jnp
from jax.experimental import pallas as pl
from jax.experimental.pallas import tpu as pltpu


# ----------------------------------------------------------------------------
# Pallas kernel: fused
#   y = tanh(x_tok @ Wt + x_node @ Wn + x_ttyp @ Wy + (lang_emb + bias))
# per-grid-step operands:
#   x_tok  : (TS, K*D)  bf16   token-subtoken embeddings for this (batch, seq-tile)
#   x_node : (TS, D)    bf16
#   x_ttyp : (TS, D)    bf16
#   Wt     : (K*D, D)   bf16   token_linear weight row-slices (constant index -> resident)
#   Wn, Wy : (D, D)     bf16
#   lb     : (1, D)     f32    language embedding + Linear bias for this batch row
#   out    : (TS, D)    bf16   (f32 accumulate + tanh, cast at the store)
# ----------------------------------------------------------------------------
def _input_proj_kernel(xt_ref, xn_ref, xy_ref, wt_ref, wn_ref, wy_ref, lb_ref, o_ref):
    acc = jnp.dot(xt_ref[...], wt_ref[...], preferred_element_type=jnp.float32)    # MXU
    acc = acc + jnp.dot(xn_ref[...], wn_ref[...], preferred_element_type=jnp.float32)
    acc = acc + jnp.dot(xy_ref[...], wy_ref[...], preferred_element_type=jnp.float32)
    acc = acc + lb_ref[...]                       # VPU add, (1, D) broadcast over (TS, D)
    o_ref[...] = jnp.tanh(acc).astype(o_ref.dtype)   # EUP tanh (input_nonlinearity)


def input_projection(x_tok, x_node, x_ttyp, w_tok, w_node, w_ttyp, lang_bias,
                     *, seq_tile=512, out_dtype=jnp.bfloat16):
    B, S, KD = x_tok.shape
    D = w_tok.shape[1]

    # Seq tile: full dim if small (exempt from the (8,128) rule), otherwise a multiple
    # of 16 so bf16 activation tiles land on fully packed sublanes.
    if S <= seq_tile:
        TS = S
    else:
        TS = max(16, (seq_tile // 16) * 16)
    # Grid: both axes independent -> "parallel" (lets v7x megacore shard them). At real
    # sizes this has >=2 steps along at least one parallel axis, so neither TC idles.
    grid = (B, pl.cdiv(S, TS))
    # TODO(synk): for workloads with very small S and large B, flattening (B,S) into one
    # M axis would restore big tiles; needs a per-row language-bias scheme, not done here.

    bf16, f32 = 2, 4
    out_bytes_per_elem = jnp.dtype(out_dtype).itemsize
    # Tight VMEM estimate: weights single-buffered (resident), activations / lang row /
    # output double-buffered by the pipeline.
    est_vmem = ((KD * D + 2 * D * D) * bf16                 # resident weights (x1)
                + 2 * (TS * KD + 2 * TS * D) * bf16         # activation tiles (x2)
                + 2 * D * f32                               # lang+bias row (x2)
                + 2 * TS * D * out_bytes_per_elem)          # output tile (x2)
    try:
        vmem_cap = int(pltpu.get_tpu_info().vmem_capacity_bytes)
    except Exception:
        vmem_cap = 64 * 1024 * 1024      # conservative: valid on every generation
    # ~2x headroom over the estimate, never more than ~75% of physical per-core VMEM.
    vmem_limit = int(min(max(2 * est_vmem, 16 * 1024 * 1024), (3 * vmem_cap) // 4))

    M = B * S
    Din = KD + 2 * D
    cost = pl.CostEstimate(
        flops=2 * M * Din * D,
        transcendentals=M * D,
        bytes_accessed=(M * Din * bf16 + Din * D * bf16 + B * D * f32
                        + M * D * out_bytes_per_elem),
    )

    def make_call(weight_pipeline_mode):
        wkw = {}
        if weight_pipeline_mode is not None:
            wkw["pipeline_mode"] = weight_pipeline_mode
        return pl.pallas_call(
            _input_proj_kernel,
            out_shape=jax.ShapeDtypeStruct((B, S, D), out_dtype),
            grid=grid,
            in_specs=[
                pl.BlockSpec((None, TS, KD), lambda b, s: (b, s, 0)),
                pl.BlockSpec((None, TS, D), lambda b, s: (b, s, 0)),
                pl.BlockSpec((None, TS, D), lambda b, s: (b, s, 0)),
                # Weights: constant block index -> DMA'd once, stay resident in VMEM.
                # Single-buffered: the default double buffer is never used and at
                # d_model=1024 it would burn ~14 MiB of VMEM for nothing.
                pl.BlockSpec((KD, D), lambda b, s: (0, 0), **wkw),
                pl.BlockSpec((D, D), lambda b, s: (0, 0), **wkw),
                pl.BlockSpec((D, D), lambda b, s: (0, 0), **wkw),
                # language embedding + bias: one (1, D) row per batch element.
                pl.BlockSpec((None, 1, D), lambda b, s: (b, 0, 0)),
            ],
            out_specs=pl.BlockSpec((None, TS, D), lambda b, s: (b, s, 0)),
            compiler_params=pltpu.CompilerParams(
                dimension_semantics=("parallel", "parallel"),
                vmem_limit_bytes=vmem_limit,
            ),
            cost_estimate=cost,
        )

    args = (x_tok, x_node, x_ttyp, w_tok, w_node, w_ttyp, lang_bias)
    try:
        return make_call(pl.Buffered(1))(*args)
    except Exception:
        # Fallback for Pallas versions that reject buffer_count=1: default pipelining.
        return make_call(None)(*args)


# ----------------------------------------------------------------------------
# Parameter init (deterministic, xavier_uniform_ like the module's _reset_parameters).
# Embedding tables + token_linear weight are kept in bf16 (native MXU dtype, halves
# DMA bytes) — a deliberate precision deviation from the f32 torch module; bias /
# language embedding and all accumulation stay in f32.
# ----------------------------------------------------------------------------
def xavier_uniform(key, shape, dtype=jnp.float32):
    fan_out, fan_in = shape[0], shape[1]
    bound = (6.0 / (fan_in + fan_out)) ** 0.5
    return jax.random.uniform(key, shape, dtype, minval=-bound, maxval=bound)


class TransformerLMEncoderParams:
    def __init__(self, key, vocab_size, num_node_types, num_token_types,
                 num_languages, subtokens_per_token, d_model,
                 matmul_dtype=jnp.bfloat16):
        K, D = subtokens_per_token, d_model
        ks = jax.random.split(key, 6)
        self.d_model = D
        self.subtokens_per_token = K
        self.token_embedding = xavier_uniform(ks[0], (vocab_size, D)).astype(matmul_dtype)
        self.node_type_embedding = xavier_uniform(ks[1], (num_node_types, D)).astype(matmul_dtype)
        self.token_type_embedding = xavier_uniform(ks[2], (num_token_types, D)).astype(matmul_dtype)
        self.language_embedding = xavier_uniform(ks[3], (num_languages, D))    # f32

        in_features = (K + 2) * D      # +1 node type, +1 token type
        # torch Linear stores weight as [out, in]; the kernel consumes [in, out],
        # pre-split into the three row-blocks multiplying token / node / token-type
        # embeddings (so the [B,S,(K+2)*D] concat never has to be materialized).
        w = jnp.transpose(xavier_uniform(ks[4], (D, in_features)))             # [in, out]
        self.w_tok = w[: K * D].astype(matmul_dtype)                           # [K*D, D]
        self.w_node = w[K * D:(K + 1) * D].astype(matmul_dtype)                # [D, D]
        self.w_ttyp = w[(K + 1) * D:].astype(matmul_dtype)                     # [D, D]
        bound = 1.0 / (in_features ** 0.5)
        self.token_linear_b = jax.random.uniform(
            ks[5], (D,), jnp.float32, minval=-bound, maxval=bound)


# ----------------------------------------------------------------------------
# Forward (gathers in plain JAX, fused projection in Pallas)
# ----------------------------------------------------------------------------
def transformer_lm_encoder_forward(params, input_tokens, input_node_types,
                                   input_token_types, languages,
                                   relative_distances=None, attention_mask=None,
                                   pad_mask=None, target_mapping=None):
    B, S, K = input_tokens.shape
    D = params.d_model

    # Embedding gathers (glue; outputs already in the matmul dtype).
    # TODO(synk): on v5e/v6e (128 MiB VMEM) the token table could be kept VMEM-resident
    # and gathered inside the kernel to avoid re-reading x_tok from HBM; not done here
    # because it does not fit on v7x (64 MiB) for realistic vocab sizes.
    tok_emb = jnp.take(params.token_embedding, input_tokens, axis=0)             # [B,S,K,D]
    x_tok = tok_emb.reshape(B, S, K * D)                                         # contiguous, free
    x_node = jnp.take(params.node_type_embedding, input_node_types, axis=0)      # [B,S,D]
    x_ttyp = jnp.take(params.token_type_embedding, input_token_types, axis=0)    # [B,S,D]

    # language_embedding(languages) + Linear bias, folded into one per-batch (1,D) row
    # instead of a materialized [B,S,D] broadcast.
    lang_bias = (jnp.take(params.language_embedding, languages, axis=0)
                 + params.token_linear_b[None, :]).reshape(B, 1, D)

    token_embeddings = input_projection(
        x_tok, x_node, x_ttyp, params.w_tok, params.w_node, params.w_ttyp, lang_bias)

    # TODO(synk): self.transformer.forward (CodeTransformer core with relative-distance
    # two-stream attention, src_mask / pad_mask / target_mapping handling) has no
    # definition in the reference code, so it is not reproduced here.
    return token_embeddings


# ----------------------------------------------------------------------------
if __name__ == "__main__":
    key = jax.random.PRNGKey(0)
    kp, k1, k2, k3, k4 = jax.random.split(key, 5)

    # Small shapes consistent with the module's forward; d_model=128 keeps the output
    # lane-dense (multiple of 128) so stores are unmasked and the MXU is fed properly.
    B, S, K = 2, 16, 5            # batch, seq_len, subtokens_per_token
    D = 128                       # d_model
    vocab_size = 64
    num_node_types = 16
    num_token_types = 8
    num_languages = 4

    params = TransformerLMEncoderParams(
        kp, vocab_size, num_node_types, num_token_types, num_languages, K, D)

    input_tokens = jax.random.randint(k1, (B, S, K), 0, vocab_size)
    input_node_types = jax.random.randint(k2, (B, S), 0, num_node_types)
    input_token_types = jax.random.randint(k3, (B, S), 0, num_token_types)
    languages = jax.random.randint(k4, (B,), 0, num_languages)

    # Interface-only inputs (consumed by the untranslated transformer core).
    relative_distances = None
    attention_mask = jnp.zeros((B, S, S), jnp.float32)
    pad_mask = jnp.zeros((B, S), jnp.float32)
    target_mapping = None

    out = transformer_lm_encoder_forward(
        params, input_tokens, input_node_types, input_token_types, languages,
        relative_distances=relative_distances, attention_mask=attention_mask,
        pad_mask=pad_mask, target_mapping=target_mapping)
    jax.block_until_ready(out)
    assert out.shape == (B, S, D) and out.dtype == jnp.bfloat16

    # Pure-JAX reference (mirrors the torch module: concat -> Linear -> +lang -> tanh).
    tok_f = jnp.take(params.token_embedding, input_tokens, axis=0).astype(jnp.float32)
    node_f = jnp.take(params.node_type_embedding, input_node_types, axis=0).astype(jnp.float32)
    ttyp_f = jnp.take(params.token_type_embedding, input_token_types, axis=0).astype(jnp.float32)
    emb_cat = jnp.concatenate(
        [tok_f, node_f[:, :, None, :], ttyp_f[:, :, None, :]], axis=-2
    ).reshape(B, S, (K + 2) * D)
    w_full = jnp.concatenate(
        [params.w_tok, params.w_node, params.w_ttyp], axis=0).astype(jnp.float32)
    lang = jnp.take(params.language_embedding, languages, axis=0)[:, None, :]
    ref = jnp.tanh(emb_cat @ w_full + params.token_linear_b + lang)
    # bf16 output quantization (<= ~4e-3 for tanh in [-1,1]) + bf16 matmul operands.
    assert jnp.allclose(out.astype(jnp.float32), ref, atol=3e-2, rtol=0.0), \
        float(jnp.max(jnp.abs(out.astype(jnp.float32) - ref)))

    print("KERNEL_OK")
</pallas_src>

<mosaic_0001>
module attributes {stable_mosaic.version = 11 : i64} {
  func.func @_input_proj_kernel(%arg0: i32, %arg1: i32, %arg2: memref<1x16x640xbf16, #tpu.memory_space<vmem>>, %arg3: memref<1x16x128xbf16, #tpu.memory_space<vmem>>, %arg4: memref<1x16x128xbf16, #tpu.memory_space<vmem>>, %arg5: memref<640x128xbf16, #tpu.memory_space<vmem>>, %arg6: memref<128x128xbf16, #tpu.memory_space<vmem>>, %arg7: memref<128x128xbf16, #tpu.memory_space<vmem>>, %arg8: memref<1x1x128xf32, #tpu.memory_space<vmem>>, %arg9: memref<1x16x128xbf16, #tpu.memory_space<vmem>>) attributes {dimension_semantics = [#tpu.dimension_semantics<parallel>, #tpu.dimension_semantics<parallel>], iteration_bounds = array<i64: 2, 1>, scalar_prefetch = 0 : i64, scratch_operands = 0 : i64, tpu.core_type = #tpu.core_type<tc>, window_params = [{transform_indices = @transform_0, window_bounds = array<i64: 1, 16, 640>}, {transform_indices = @transform_1, window_bounds = array<i64: 1, 16, 128>}, {transform_indices = @transform_2, window_bounds = array<i64: 1, 16, 128>}, {pipeline_mode = #tpu.pipeline_mode<synchronous>, transform_indices = @transform_3, window_bounds = array<i64: 640, 128>}, {pipeline_mode = #tpu.pipeline_mode<synchronous>, transform_indices = @transform_4, window_bounds = array<i64: 128, 128>}, {pipeline_mode = #tpu.pipeline_mode<synchronous>, transform_indices = @transform_5, window_bounds = array<i64: 128, 128>}, {transform_indices = @transform_6, window_bounds = array<i64: 1, 1, 128>}, {transform_indices = @transform_7, window_bounds = array<i64: 1, 16, 128>}]} {
    %c0 = arith.constant 0 : index
    %c0_0 = arith.constant 0 : index
    %c0_1 = arith.constant 0 : index
    %0 = vector.load %arg2[%c0, %c0_0, %c0_1] : memref<1x16x640xbf16, #tpu.memory_space<vmem>>, vector<1x16x640xbf16>
    %1 = vector.shape_cast %0 : vector<1x16x640xbf16> to vector<16x640xbf16>
    %c0_2 = arith.constant 0 : index
    %c0_3 = arith.constant 0 : index
    %2 = vector.load %arg5[%c0_2, %c0_3] : memref<640x128xbf16, #tpu.memory_space<vmem>>, vector<640x128xbf16>
    %cst = arith.constant dense<0.000000e+00> : vector<16x128xf32>
    %3 = tpu.matmul %1, %2, %cst {dimension_numbers = #tpu.dot_dimension_numbers<[1], [0], [0], [1], [0, 0, 1, 1], [], []>} : vector<16x640xbf16>, vector<640x128xbf16>, vector<16x128xf32> -> vector<16x128xf32>
    %c0_4 = arith.constant 0 : index
    %c0_5 = arith.constant 0 : index
    %c0_6 = arith.constant 0 : index
    %4 = vector.load %arg3[%c0_4, %c0_5, %c0_6] : memref<1x16x128xbf16, #tpu.memory_space<vmem>>, vector<1x16x128xbf16>
    %5 = vector.shape_cast %4 : vector<1x16x128xbf16> to vector<16x128xbf16>
    %c0_7 = arith.constant 0 : index
    %c0_8 = arith.constant 0 : index
    %6 = vector.load %arg6[%c0_7, %c0_8] : memref<128x128xbf16, #tpu.memory_space<vmem>>, vector<128x128xbf16>
    %cst_9 = arith.constant dense<0.000000e+00> : vector<16x128xf32>
    %7 = tpu.matmul %5, %6, %cst_9 {dimension_numbers = #tpu.dot_dimension_numbers<[1], [0], [0], [1], [0, 0, 1, 1], [], []>} : vector<16x128xbf16>, vector<128x128xbf16>, vector<16x128xf32> -> vector<16x128xf32>
    %8 = arith.addf %3, %7 : vector<16x128xf32>
    %c0_10 = arith.constant 0 : index
    %c0_11 = arith.constant 0 : index
    %c0_12 = arith.constant 0 : index
    %9 = vector.load %arg4[%c0_10, %c0_11, %c0_12] : memref<1x16x128xbf16, #tpu.memory_space<vmem>>, vector<1x16x128xbf16>
    %10 = vector.shape_cast %9 : vector<1x16x128xbf16> to vector<16x128xbf16>
    %c0_13 = arith.constant 0 : index
    %c0_14 = arith.constant 0 : index
    %11 = vector.load %arg7[%c0_13, %c0_14] : memref<128x128xbf16, #tpu.memory_space<vmem>>, vector<128x128xbf16>
    %cst_15 = arith.constant dense<0.000000e+00> : vector<16x128xf32>
    %12 = tpu.matmul %10, %11, %cst_15 {dimension_numbers = #tpu.dot_dimension_numbers<[1], [0], [0], [1], [0, 0, 1, 1], [], []>} : vector<16x128xbf16>, vector<128x128xbf16>, vector<16x128xf32> -> vector<16x128xf32>
    %13 = arith.addf %8, %12 : vector<16x128xf32>
    %c0_16 = arith.constant 0 : index
    %c0_17 = arith.constant 0 : index
    %c0_18 = arith.constant 0 : index
    %14 = vector.load %arg8[%c0_16, %c0_17, %c0_18] : memref<1x1x128xf32, #tpu.memory_space<vmem>>, vector<1x1x128xf32>
    %15 = vector.shape_cast %14 : vector<1x1x128xf32> to vector<1x128xf32>
    %16 = vector.broadcast %15 : vector<1x128xf32> to vector<16x128xf32>
    %17 = arith.addf %13, %16 : vector<16x128xf32>
    %18 = math.tanh %17 : vector<16x128xf32>
    %19 = arith.truncf %18 : vector<16x128xf32> to vector<16x128xbf16>
    %c0_19 = arith.constant 0 : index
    %c0_20 = arith.constant 0 : index
    %c0_21 = arith.constant 0 : index
    %20 = vector.load %arg9[%c0_19, %c0_20, %c0_21] : memref<1x16x128xbf16, #tpu.memory_space<vmem>>, vector<1x16x128xbf16>
    %21 = vector.shape_cast %20 : vector<1x16x128xbf16> to vector<16x128xbf16>
    %22 = vector.shape_cast %19 : vector<16x128xbf16> to vector<1x16x128xbf16>
    tpu.vector_store %arg9[%c0_19, %c0_20, %c0_21], %22 {strides = array<i32>} : memref<1x16x128xbf16, #tpu.memory_space<vmem>>, vector<1x16x128xbf16>,
    return
  }
  func.func @transform_0(%arg0: i32, %arg1: i32) -> (i32, i32, i32) {
    %c0_i32 = arith.constant 0 : i32
    %c0_i32_0 = arith.constant 0 : i32
    return %arg0, %arg1, %c0_i32 : i32, i32, i32
  }
  func.func @transform_1(%arg0: i32, %arg1: i32) -> (i32, i32, i32) {
    %c0_i32 = arith.constant 0 : i32
    %c0_i32_0 = arith.constant 0 : i32
    return %arg0, %arg1, %c0_i32 : i32, i32, i32
  }
  func.func @transform_2(%arg0: i32, %arg1: i32) -> (i32, i32, i32) {
    %c0_i32 = arith.constant 0 : i32
    %c0_i32_0 = arith.constant 0 : i32
    return %arg0, %arg1, %c0_i32 : i32, i32, i32
  }
  func.func @transform_3(%arg0: i32, %arg1: i32) -> (i32, i32) {
    %c0_i32 = arith.constant 0 : i32
    %c0_i32_0 = arith.constant 0 : i32
    %c0_i32_1 = arith.constant 0 : i32
    return %c0_i32, %c0_i32_0 : i32, i32
  }
  func.func @transform_4(%arg0: i32, %arg1: i32) -> (i32, i32) {
    %c0_i32 = arith.constant 0 : i32
    %c0_i32_0 = arith.constant 0 : i32
    %c0_i32_1 = arith.constant 0 : i32
    return %c0_i32, %c0_i32_0 : i32, i32
  }
  func.func @transform_5(%arg0: i32, %arg1: i32) -> (i32, i32) {
    %c0_i32 = arith.constant 0 : i32
    %c0_i32_0 = arith.constant 0 : i32
    %c0_i32_1 = arith.constant 0 : i32
    return %c0_i32, %c0_i32_0 : i32, i32
  }
  func.func @transform_6(%arg0: i32, %arg1: i32) -> (i32, i32, i32) {
    %c0_i32 = arith.constant 0 : i32
    %c0_i32_0 = arith.constant 0 : i32
    %c0_i32_1 = arith.constant 0 : i32
    return %arg0, %c0_i32, %c0_i32_0 : i32, i32, i32
  }
  func.func @transform_7(%arg0: i32, %arg1: i32) -> (i32, i32, i32) {
    %c0_i32 = arith.constant 0 : i32
    %c0_i32_0 = arith.constant 0 : i32
    return %arg0, %arg1, %c0_i32 : i32, i32, i32
  }
}

module attributes {stable_mosaic.version = 11 : i64} {
  func.func @_input_proj_kernel(%arg0: i32, %arg1: i32, %arg2: memref<1x16x640xbf16, #tpu.memory_space<vmem>>, %arg3: memref<1x16x128xbf16, #tpu.memory_space<vmem>>, %arg4: memref<1x16x128xbf16, #tpu.memory_space<vmem>>, %arg5: memref<640x128xbf16, #tpu.memory_space<vmem>>, %arg6: memref<128x128xbf16, #tpu.memory_space<vmem>>, %arg7: memref<128x128xbf16, #tpu.memory_space<vmem>>, %arg8: memref<1x1x128xf32, #tpu.memory_space<vmem>>, %arg9: memref<1x16x128xbf16, #tpu.memory_space<vmem>>) attributes {dimension_semantics = [#tpu.dimension_semantics<parallel>, #tpu.dimension_semantics<parallel>], iteration_bounds = array<i64: 2, 1>, scalar_prefetch = 0 : i64, scratch_operands = 0 : i64, tpu.core_type = #tpu.core_type<tc>, window_params = [{transform_indices = @transform_0, window_bounds = array<i64: 1, 16, 640>}, {transform_indices = @transform_1, window_bounds = array<i64: 1, 16, 128>}, {transform_indices = @transform_2, window_bounds = array<i64: 1, 16, 128>}, {pipeline_mode = #tpu.pipeline_mode<synchronous>, transform_indices = @transform_3, window_bounds = array<i64: 640, 128>}, {pipeline_mode = #tpu.pipeline_mode<synchronous>, transform_indices = @transform_4, window_bounds = array<i64: 128, 128>}, {pipeline_mode = #tpu.pipeline_mode<synchronous>, transform_indices = @transform_5, window_bounds = array<i64: 128, 128>}, {transform_indices = @transform_6, window_bounds = array<i64: 1, 1, 128>}, {transform_indices = @transform_7, window_bounds = array<i64: 1, 16, 128>}]} {
    %c0 = arith.constant 0 : index
    %c0_0 = arith.constant 0 : index
    %c0_1 = arith.constant 0 : index
    %0 = vector.load %arg2[%c0, %c0_0, %c0_1] : memref<1x16x640xbf16, #tpu.memory_space<vmem>>, vector<1x16x640xbf16>
    %1 = vector.shape_cast %0 : vector<1x16x640xbf16> to vector<16x640xbf16>
    %c0_2 = arith.constant 0 : index
    %c0_3 = arith.constant 0 : index
    %2 = vector.load %arg5[%c0_2, %c0_3] : memref<640x128xbf16, #tpu.memory_space<vmem>>, vector<640x128xbf16>
    %cst = arith.constant dense<0.000000e+00> : vector<16x128xf32>
    %3 = tpu.matmul %1, %2, %cst {dimension_numbers = #tpu.dot_dimension_numbers<[1], [0], [0], [1], [0, 0, 1, 1], [], []>} : vector<16x640xbf16>, vector<640x128xbf16>, vector<16x128xf32> -> vector<16x128xf32>
    %c0_4 = arith.constant 0 : index
    %c0_5 = arith.constant 0 : index
    %c0_6 = arith.constant 0 : index
    %4 = vector.load %arg3[%c0_4, %c0_5, %c0_6] : memref<1x16x128xbf16, #tpu.memory_space<vmem>>, vector<1x16x128xbf16>
    %5 = vector.shape_cast %4 : vector<1x16x128xbf16> to vector<16x128xbf16>
    %c0_7 = arith.constant 0 : index
    %c0_8 = arith.constant 0 : index
    %6 = vector.load %arg6[%c0_7, %c0_8] : memref<128x128xbf16, #tpu.memory_space<vmem>>, vector<128x128xbf16>
    %cst_9 = arith.constant dense<0.000000e+00> : vector<16x128xf32>
    %7 = tpu.matmul %5, %6, %cst_9 {dimension_numbers = #tpu.dot_dimension_numbers<[1], [0], [0], [1], [0, 0, 1, 1], [], []>} : vector<16x128xbf16>, vector<128x128xbf16>, vector<16x128xf32> -> vector<16x128xf32>
    %8 = arith.addf %3, %7 : vector<16x128xf32>
    %c0_10 = arith.constant 0 : index
    %c0_11 = arith.constant 0 : index
    %c0_12 = arith.constant 0 : index
    %9 = vector.load %arg4[%c0_10, %c0_11, %c0_12] : memref<1x16x128xbf16, #tpu.memory_space<vmem>>, vector<1x16x128xbf16>
    %10 = vector.shape_cast %9 : vector<1x16x128xbf16> to vector<16x128xbf16>
    %c0_13 = arith.constant 0 : index
    %c0_14 = arith.constant 0 : index
    %11 = vector.load %arg7[%c0_13, %c0_14] : memref<128x128xbf16, #tpu.memory_space<vmem>>, vector<128x128xbf16>
    %cst_15 = arith.constant dense<0.000000e+00> : vector<16x128xf32>
    %12 = tpu.matmul %10, %11, %cst_15 {dimension_numbers = #tpu.dot_dimension_numbers<[1], [0], [0], [1], [0, 0, 1, 1], [], []>} : vector<16x128xbf16>, vector<128x128xbf16>, vector<16x128xf32> -> vector<16x128xf32>
    %13 = arith.addf %8, %12 : vector<16x128xf32>
    %c0_16 = arith.constant 0 : index
    %c0_17 = arith.constant 0 : index
    %c0_18 = arith.constant 0 : index
    %14 = vector.load %arg8[%c0_16, %c0_17, %c0_18] : memref<1x1x128xf32, #tpu.memory_space<vmem>>, vector<1x1x128xf32>
    %15 = vector.shape_cast %14 : vector<1x1x128xf32> to vector<1x128xf32>
    %16 = vector.broadcast %15 : vector<1x128xf32> to vector<16x128xf32>
    %17 = arith.addf %13, %16 : vector<16x128xf32>
    %18 = math.tanh %17 : vector<16x128xf32>
    %19 = arith.truncf %18 : vector<16x128xf32> to vector<16x128xbf16>
    %c0_19 = arith.constant 0 : index
    %c0_20 = arith.constant 0 : index
    %c0_21 = arith.constant 0 : index
    %20 = vector.load %arg9[%c0_19, %c0_20, %c0_21] : memref<1x16x128xbf16, #tpu.memory_space<vmem>>, vector<1x16x128xbf16>
    %21 = vector.shape_cast %20 : vector<1x16x128xbf16> to vector<16x128xbf16>
    %22 = vector.shape_cast %19 : vector<16x128xbf16> to vector<1x16x128xbf16>
    tpu.vector_store %arg9[%c0_19, %c0_20, %c0_21], %22 {strides = array<i32>} : memref<1x16x128xbf16, #tpu.memory_space<vmem>>, vector<1x16x128xbf16>,
    return
  }
  func.func @transform_0(%arg0: i32, %arg1: i32) -> (i32, i32, i32) {
    %c0_i32 = arith.constant 0 : i32
    %c0_i32_0 = arith.constant 0 : i32
    return %arg0, %arg1, %c0_i32 : i32, i32, i32
  }
  func.func @transform_1(%arg0: i32, %arg1: i32) -> (i32, i32, i32) {
    %c0_i32 = arith.constant 0 : i32
    %c0_i32_0 = arith.constant 0 : i32
    return %arg0, %arg1, %c0_i32 : i32, i32, i32
  }
  func.func @transform_2(%arg0: i32, %arg1: i32) -> (i32, i32, i32) {
    %c0_i32 = arith.constant 0 : i32
    %c0_i32_0 = arith.constant 0 : i32
    return %arg0, %arg1, %c0_i32 : i32, i32, i32
  }
  func.func @transform_3(%arg0: i32, %arg1: i32) -> (i32, i32) {
    %c0_i32 = arith.constant 0 : i32
    %c0_i32_0 = arith.constant 0 : i32
    %c0_i32_1 = arith.constant 0 : i32
    return %c0_i32, %c0_i32_0 : i32, i32
  }
  func.func @transform_4(%arg0: i32, %arg1: i32) -> (i32, i32) {
    %c0_i32 = arith.constant 0 : i32
    %c0_i32_0 = arith.constant 0 : i32
    %c0_i32_1 = arith.constant 0 : i32
    return %c0_i32, %c0_i32_0 : i32, i32
  }
  func.func @transform_5(%arg0: i32, %arg1: i32) -> (i32, i32) {
    %c0_i32 = arith.constant 0 : i32
    %c0_i32_0 = arith.constant 0 : i32
    %c0_i32_1 = arith.constant 0 : i32
    return %c0_i32, %c0_i32_0 : i32, i32
  }
  func.func @transform_6(%arg0: i32, %arg1: i32) -> (i32, i32, i32) {
    %c0_i32 = arith.constant 0 : i32
    %c0_i32_0 = arith.constant 0 : i32
    %c0_i32_1 = arith.constant 0 : i32
    return %arg0, %c0_i32, %c0_i32_0 : i32, i32, i32
  }
  func.func @transform_7(%arg0: i32, %arg1: i32) -> (i32, i32, i32) {
    %c0_i32 = arith.constant 0 : i32
    %c0_i32_0 = arith.constant 0 : i32
    return %arg0, %arg1, %c0_i32 : i32, i32, i32
  }
}

</mosaic_0001>

<bundles_post_ra>
// kernel: tpu_custom_call.1
= control target key start
LH: loop header
LB: loop body
LE: loop exit
PB: predicated region body
PF: predicated region fallthrough
CT: control target
= control target key end

     0   :  { %s2305_s0 = inlined_call_operand.hbm [shape: bf16[2,16,640], index: 0, kind: input, shape index: {}]   ;;  %s2306_s1 = inlined_call_operand.hbm [shape: bf16[2,16,128], index: 1, kind: input, shape index: {}]   ;;  %s2307_s2 = inlined_call_operand.hbm [shape: bf16[2,16,128], index: 2, kind: input, shape index: {}]   ;;  %s2308_s3 = inlined_call_operand.hbm [shape: bf16[640,128], index: 3, kind: input, shape index: {}]   ;;  %s2309_s4 = inlined_call_operand.hbm [shape: bf16[128,128], index: 4, kind: input, shape index: {}]   ;;  %s2310_s5 = inlined_call_operand.hbm [shape: bf16[128,128], index: 5, kind: input, shape index: {}]   ;;  %s2311_s6 = inlined_call_operand.vmem [shape: f32[2,1,128], index: 6, kind: input, shape index: {}]   ;;  %s2312_s7 = inlined_call_operand.hbm [shape: bf16[2,16,128], index: 7, kind: output, shape index: {}]  }
   0x1   :  { %2324 = sst [smem:[#allocation25_spill]] %s2306_s1 }
   0x2   :  { %2325 = sst [smem:[#allocation26_spill]] %s2307_s2 }
   0x3   :  { %2326 = sst [smem:[#allocation27_spill]] %s2308_s3 }
   0x4   :  { %2327 = sst [smem:[#allocation28_spill]] %s2309_s4 }
   0x5   :  { %2328 = sst [smem:[#allocation29_spill]] %s2312_s7 }
   0x6   :  { %12 = vsyncpa [#allocation3], 0 }
   0x7   :  { %14 = vsyncpa [#allocation3 + $0x1], 0 }
   0x8   :  { %15 = vsyncpa [#allocation6], 0 }
   0x9   :  { %17 = vsyncpa [#allocation6 + $0x1], 0 }
   0xa   :  { %18 = vsyncpa [#allocation9], 0 }
   0xb   :  { %19 = vsyncpa [#allocation12], 0 }
   0xc   :  { %20 = vsyncpa [#allocation4], 0 }
   0xd   :  { %22 = vsyncpa [#allocation4 + $0x1], 0  ;;  %s2066_s24 = smov 0   ;;  %s2068_s25 = smov 0  }
   0xe   :  { %s2070_s26 = smov 0   ;;  %s2072_s27 = smov 0  }
   0xf   :  { %s2074_s28 = smov 0   ;;  %s2076_s29 = smov 0  }
  0x10 LB: > { %2329 = sst [smem:[#allocation19_spill]] %s1995_s24  ;;  %s2097_s30 = sadd.s32 4294967295, %s2015_s29   ;;  %s2015_s29 = sphi %s2076_s29, %s28_s29   ;;  %s2011_s28 = sphi %s2074_s28, %s2358_s28   ;;  %s2007_s27 = sphi %s2072_s27, %s2357_s27   ;;  %s2003_s26 = sphi %s2070_s26, %s2353_s26   ;;  %s1999_s25 = sphi %s2068_s25, %s2356_s25   ;;  %s1995_s24 = sphi %s2066_s24, %s2355_s24  }
  0x11   : > { %2330 = sst [smem:[#allocation20_spill]] %s2003_s26  ;;  %s1276_s8 = sadd.s32 4294967294, %s2015_s29  }
  0x12   : > { %p62_p0 = scmp.ne.s32.totalorder %s1999_s25, %s1995_s24  ;;  %p63_p1 = scmp.eq.s32.totalorder %s2097_s30, 0 }
  0x13   : > { %p233_p2 = scmp.eq.s32.totalorder %s2097_s30, 1  ;;  %p239_p3 = scmp.eq.s32.totalorder %s1276_s8, 1 }
  0x14   : > { %p2106_p4 = por %p63_p1, %p62_p0  ;;  %p1277_p5 = scmp.ge.s32.totalorder %s2015_s29, 1 }
  0x15   : > { %p2111_p6 = por %p239_p3, %p62_p0  ;;  %p246_p7 = scmp.lt.s32.totalorder %s2015_s29, 3 }
  0x16   : > { %s2334_s3 = sld [smem:[#allocation27_spill]]  ;;  %s2017_s15 = smov [#allocation8]  }
  0x17   : > { %s2332_s10 = scalar_select %p2111_p6, 1, 0 }
  0x18   : > { %p2119_p8 = pnand %p1277_p5, %p246_p7  ;;  %s259_s16 = sshll.u32 %s2017_s15, 4  ;;  %s260_s16 = int_to_ptr.vmem [resolvable:$true] %s259_s16 }
  0x19   : > { %2333 = sst [smem:[#allocation21_spill]] %s2332_s10  ;;  %s2313_s18 = smov 64  }
  0x1a   : > { %p1647_p9 = pneg %p2119_p8  ;;  %s2315_s19 = smov 4  }
  0x1b   : > { %s40_s20 = sadd.s32 1, %s2011_s28  ;;  %s49_s21 = sadd.s32 1, %s2003_s26 }
  0x1c   : > { %s257_s13 = sshll.u32 %s2334_s3, 4  ;;  %p2127_p10 = pnand %p1647_p9, %p63_p1  ;;  %s258_s13 = int_to_ptr.hbm [resolvable:$true] %s257_s13 }
  0x1d   : > { %p42_p12 = scmp.ge.s32.totalorder %s40_s20, 2  ;;  %p56_p13 = scmp.ne.s32.totalorder %s2003_s26, %s1999_s25 }
  0x1e   : > { %1650 = dma.hbm_to_vmem [thread:$0]  (!%p2127_p10), %s258_s13, 5120, %s260_s16, [#allocation9], %s2313_s18, %s2313_s18, %s2315_s19  }
  0x1f   : > { %p57_p0 = scmp.eq.s32.totalorder %s2015_s29, 0  ;;  %s2360_s20 = smov (%p42_p12, %s40_s20), 0 }
  0x20   : > { %2337 = sst [smem:[#allocation22_spill]] %s2360_s20  ;;  %p2146_p5 = por %p233_p2, %p56_p13 }
  0x21   : > { %p58_p3 = por %p57_p0, %p56_p13  ;;  %s44_s23 = ssub.s32 %s2011_s28, %s2360_s20 }
  0x22   : > { %s2338_s22 = scalar_select %p2146_p5, 1, 0 }
  0x23   : > { %p1674_p7 = scmp.lt.s32.totalorder %s2015_s29, 2  ;;  %p47_p9 = scmp.eq.s32.totalorder %s44_s23, 0 }
  0x24   : > { %2339 = sst [smem:[#allocation23_spill]] %s2338_s22  ;;  %s2154_s8 = sand.u32 1, %s2003_s26  }
  0x25   : > { %p2156_p11 = pnand %p1674_p7, %p58_p3  ;;  %s326_s12 = sand.u32 1, %s2015_s29  }
  0x26   : > { %s2162_s13 = scalar_select %p47_p9, %s2003_s26, %s49_s21  }
  0x27   : > { %s1283_s15 = sshll.u32 %s2154_s8, 3  ;;  %s1553_s16 = sshll.u32 %s2011_s28, 3 }
  0x28   : > { %2341 = sst [smem:[#allocation24_spill]] %s2162_s13  ;;  %s330_s10 = scalar_lea.vmem [#allocation5], %s1283_s15 }
  0x29   : > { %s2342_s1 = sld [smem:[#allocation25_spill]]  ;;  %s340_s23 = sshll.u32 %s330_s10, 4  ;;  %s341_s23 = int_to_ptr.vmem [resolvable:$true] %s340_s23 }
  0x2a   : > { %s2169_s24 = scalar_lea.sflag [#allocation6], %s326_s12  ;;  %s2343_s22 = smov 4  }
  0x2b   : > { %s2344_s7 = smov 64   ;;  %s2345_s2 = sld [smem:[#allocation26_spill]] }
  0x2c   : > { %s2346_s4 = sld [smem:[#allocation28_spill]]  ;;  %s1625_s19 = smul.u32 40, %s2011_s28 }
  0x2d   : > { %s2219_s17 = sand.u32 (!%p2119_p8), 1, %s1999_s25  }
  0x2f   : > { %s337_s3 = scalar_lea.hbm %s2342_s1, %s1553_s16 }
  0x30   : > { %s338_s20 = sshll.u32 %s337_s3, 4  ;;  %s354_s3 = scalar_lea.vmem [#allocation7], %s1283_s15  ;;  %s339_s20 = int_to_ptr.hbm [resolvable:$true] %s338_s20 }
  0x31   : > { %1663 = dma.hbm_to_vmem [thread:$0]  (!%p2156_p11), %s339_s20, 128, %s341_s23, %s2169_s24, %s2344_s7, %s2344_s7, %s2343_s22  }
  0x32   : > { %s361_s26 = scalar_lea.hbm %s2345_s2, %s1553_s16  ;;  %s364_s10 = sshll.u32 %s354_s3, 4  ;;  %s2182_s10 = int_to_ptr.vmem [resolvable:$true] %s364_s10 }
  0x33   : > { %s362_s18 = sshll.u32 %s361_s26, 4  ;;  %s271_s1 = sshll.u32 %s2346_s4, 4  ;;  %s2180_s18 = int_to_ptr.hbm [resolvable:$true] %s362_s18  ;;  %s272_s1 = int_to_ptr.hbm [resolvable:$true] %s271_s1 }
  0x34   : > { %s2020_s20 = smov [#allocation10]   ;;  %s285_s26 = sshll.u32 %s2310_s5, 4  ;;  %s286_s26 = int_to_ptr.hbm [resolvable:$true] %s285_s26 }
  0x35   : > { %s273_s23 = sshll.u32 %s2020_s20, 4  ;;  %s2021_s15 = smov [#allocation11]   ;;  %s274_s23 = int_to_ptr.vmem [resolvable:$true] %s273_s23 }
  0x36   : > { %1653 = dma.hbm_to_vmem [thread:$0]  (!%p2127_p10), %s272_s1, 1024, %s274_s23, [#allocation9], %s2344_s7, %s2344_s7, %s2343_s22  }
  0x37   : > { %s287_s21 = sshll.u32 %s2021_s15, 4  ;;  %s1624_s3 = smul.u32 40, %s2154_s8  ;;  %s288_s21 = int_to_ptr.vmem [resolvable:$true] %s287_s21 }
  0x38   : > { %1656 = dma.hbm_to_vmem [thread:$0]  (!%p2127_p10), %s286_s26, 1024, %s288_s21, [#allocation12], %s2344_s7, %s2344_s7, %s2343_s22  }
  0x39   : > { %s305_s12 = scalar_lea.vmem [#allocation2], %s1624_s3  ;;  %s313_s23 = scalar_lea.hbm %s2305_s0, %s1625_s19 }
  0x3a   : > { %s316_s20 = sshll.u32 %s305_s12, 4  ;;  %s314_s16 = sshll.u32 %s313_s23, 4  ;;  %s317_s20 = int_to_ptr.vmem [resolvable:$true] %s316_s20  ;;  %s315_s16 = int_to_ptr.hbm [resolvable:$true] %s314_s16 }
  0x3b   : > { %s302_s2 = scalar_lea.sflag [#allocation3], %s2154_s8  ;;  %s2022_s4 = smov 320  }
  0x3c   : > { %s2023_s15 = smov 20   ;;  %382 = sbr.rel (%p2119_p8) target bundleno = 297 (0x129), region = 48 }
  0x3d   : > { %1660 = dma.hbm_to_vmem [thread:$0]  (!%p2156_p11), %s315_s16, 640, %s317_s20, %s302_s2, %s2022_s4, %s2022_s4, %s2023_s15  }
  0x3e   : > { %1666 = dma.hbm_to_vmem [thread:$0]  (!%p2156_p11), %s2180_s18, 128, %s2182_s10, %s2169_s24, %s2344_s7, %s2344_s7, %s2343_s22  }
  0x3f   : > { %s1626_s26 = smul.u32 (!%p2119_p8), 40, %s2219_s17  ;;  %s385_s8 = scalar_lea.sflag (!%p2119_p8), [#allocation3], %s2219_s17 }
  0x41   : > { %s2223_s21 = scalar_lea.vmem [#allocation2], %s1626_s26 }
  0x42   : > { %1974 = dma.done.wait (%p2106_p4), %s385_s8, 640  }
  0x43   : > { %1976 = vsyncadd (%p2106_p4), %s385_s8, 4294966656  ;;  %s394_s2 = sand.u32 1, %s2097_s30   ;;  %s2231_s4 = sshll.u32 %s2219_s17, 3 }
  0x44   : > { %s395_s7 = scalar_lea.sflag [#allocation6], %s394_s2  ;;  %s398_s24 = scalar_lea.vmem [#allocation5], %s2231_s4 }
  0x45   : > { %1978 = dma.done.wait (%p2106_p4), %s395_s7, 256  }
  0x46   : > { %1980 = vsyncadd (%p2106_p4), %s395_s7, 4294967040  ;;  %s408_s14 = scalar_lea.vmem [#allocation7], %s2231_s4 }
  0x47   : > { %1982 = dma.done.wait (%p63_p1), [#allocation9], 6144  }
  0x48   : > { %1984 = vsyncadd (%p63_p1), [#allocation9], 4294961152 }
  0x49   : > { %1986 = dma.done.wait (%p63_p1), [#allocation12], 1024  }
  0x4a   : > { %1988 = vsyncadd (%p63_p1), [#allocation12], 4294966272  ;;  %v1608_v0 = vld [vmem:[#allocation10 + $0x38] sm:$0xff]  ;;  %v1607_v3 = vld [vmem:[#allocation10 + $0x30] sm:$0xff]  ;;  %p471_p1 = scmp.lt.s32.totalorder %s2007_s27, 1  ;;  %s1618_s18 = sshll.u32 %s2007_s27, 3 }
  0x4b   : > { %v1567_v1 = vld [vmem:[#allocation8 + $0x38] sm:$0xff]  ;;  %633 = vmatpush.bf16.msra.mxu0 %v1608_v0  ;;  %v1566_v4 = vld [vmem:[#allocation8 + $0x30] sm:$0xff]  ;;  %v1606_v8 = vld [vmem:[#allocation10 + $0x28] sm:$0xff]  ;;  %s2347_s19 = sld [smem:[#allocation29_spill]]  ;;  %s467_s13 = scalar_lea.vmem [#allocation13], %s2231_s4 }
  0x4c   : > { %v1575_v2 = vld [vmem:[#allocation8 + $0x78] sm:$0xff]  ;;  %913 = vmatpush.bf16.msra.mxu1 %v1567_v1  ;;  %v1574_v6 = vld [vmem:[#allocation8 + $0x70] sm:$0xff]  ;;  %v1565_v9 = vld [vmem:[#allocation8 + $0x28] sm:$0xff]  ;;  %s472_s30 = scalar_select %p471_p1, %s2007_s27, 1 }
  0x4d   : > { %v1583_v5 = vld [vmem:[#allocation8 + $0xb8] sm:$0xff]  ;;  %927 = vmatpush.bf16.msra.mxu2 %v1575_v2  ;;  %v1582_v7 = vld [vmem:[#allocation8 + $0xb0] sm:$0xff]  ;;  %v1573_v10 = vld [vmem:[#allocation8 + $0x68] sm:$0xff]  ;;  %s1098_s1 = sshll.u32 %s467_s13, 4  ;;  %s1084_s16 = scalar_lea.sflag [#allocation4], %s2219_s17  ;;  %s1099_s1 = int_to_ptr.vmem [resolvable:$true] %s1098_s1 }
  0x4e   : > { %941 = vmatpush.bf16.msra.mxu3 %v1583_v5  ;;  %v1581_v11 = vld [vmem:[#allocation8 + $0xa8] sm:$0xff]  ;;  %v1605_v12 = vld [vmem:[#allocation10 + $0x20] sm:$0xff]  ;;  %v1604_v16 = vld [vmem:[#allocation10 + $0x18] sm:$0xff]  ;;  %s473_s11 = scalar_lea.vmem %s2311_s6, %s472_s30 }
  0x4f   : > { %634 = vmatpush.bf16.msra.mxu0 %v1607_v3  ;;  %v1564_v13 = vld [vmem:[#allocation8 + $0x20] sm:$0xff]  ;;  %v1563_v17 = vld [vmem:[#allocation8 + $0x18] sm:$0xff]  ;;  %v1603_v20 = vld [vmem:[#allocation10 + $0x10] sm:$0xff] }
  0x50   : > { %914 = vmatpush.bf16.msra.mxu1 %v1566_v4  ;;  %v1572_v14 = vld [vmem:[#allocation8 + $0x60] sm:$0xff]  ;;  %v1571_v18 = vld [vmem:[#allocation8 + $0x58] sm:$0xff]  ;;  %v1562_v21 = vld [vmem:[#allocation8 + $0x10] sm:$0xff] }
  0x51   : > { %928 = vmatpush.bf16.msra.mxu2 %v1574_v6  ;;  %v1580_v15 = vld [vmem:[#allocation8 + $0xa0] sm:$0xff]  ;;  %v1579_v19 = vld [vmem:[#allocation8 + $0x98] sm:$0xff]  ;;  %v1570_v22 = vld [vmem:[#allocation8 + $0x50] sm:$0xff]  ;;  %s1097_s20 = scalar_lea.hbm %s2347_s19, %s1618_s18 }
  0x52   : > { %942 = vmatpush.bf16.msra.mxu3 %v1582_v7  ;;  %v1578_v23 = vld [vmem:[#allocation8 + $0x90] sm:$0xff]  ;;  %v1602_v24 = vld [vmem:[#allocation10 + $0x8] sm:$0xff]  ;;  %v1601_v28 = vld [vmem:[#allocation10] sm:$0xff]  ;;  %s1100_s23 = sshll.u32 %s1097_s20, 4  ;;  %s1101_s23 = int_to_ptr.hbm [resolvable:$true] %s1100_s23 }
  0x53   : > { %635 = vmatpush.bf16.msra.mxu0 %v1606_v8  ;;  %v1561_v25 = vld [vmem:[#allocation8 + $0x8] sm:$0xff]  ;;  %v1560_v29 = vld [vmem:[#allocation8] sm:$0xff]  ;;  %v1591_v31 = vld [vmem:[#allocation8 + $0xf8] sm:$0xff]  ;;  %s1935_s15 = sshra.s32 %s1101_s23, 4  ;;  %s1936_s15 = int_to_ptr.hbm [resolvable:$true] %s1935_s15 }
  0x54   : > { %915 = vmatpush.bf16.msra.mxu1 %v1565_v9  ;;  %v1569_v26 = vld [vmem:[#allocation8 + $0x48] sm:$0xff]  ;;  %v1568_v30 = vld [vmem:[#allocation8 + $0x40] sm:$0xff]  ;;  %v1555_v32 = vld [vmem:[%s2223_s21 + $0x4] sm:$0xf]  ;;  %s1937_s27 = scalar_lea.hbm %s1936_s15, 8  ;;  %p1942_p10 = scmp.lt.s32.totalorder %s1936_s15, %s2347_s19 }
  0x55   : > { %929 = vmatpush.bf16.msra.mxu2 %v1573_v10  ;;  %v1577_v27 = vld [vmem:[#allocation8 + $0x88] sm:$0xff]  ;;  %v1334_v34 = vld [vmem:[%s2223_s21] sm:$0xf]  ;;  %v1576_v38 = vld [vmem:[#allocation8 + $0x80] sm:$0xff]  ;;  %p1938_p2 = scmp.ne.s32.totalorder %s1936_s15, %s1937_s27 }
  0x56   : > { %943 = vmatpush.bf16.msra.mxu3 %v1581_v11  ;;  %v1336_v33 = vld [vmem:[%s2223_s21 + $0x14] sm:$0xf0]  ;;  %v1557_v35 = vld [vmem:[%s2223_s21 + $0x10] sm:$0xf0]  ;;  %v1599_v36 = vld [vmem:[#allocation8 + $0x138] sm:$0xff] }
  0x57   : > { %636 = vmatpush.bf16.msra.mxu0 %v1605_v12  ;;  %v1617_v37 = vld [vmem:[#allocation11 + $0x38] sm:$0xff]  ;;  %v1600_v39 = vld [vmem:[%s398_s24] sm:$0xff]  ;;  %v1339_v40 = vor.u32 %v1555_v32, %v1336_v33  ;;  %v1558_v42 = vld [vmem:[%s2223_s21 + $0x18] sm:$0xf0]  ;;  %v1335_v43 = vor.u32 %v1557_v35, %v1334_v34  ;;  %p1939_p4 = pnand %p1938_p2, %p2146_p5 }
  0x58   : > { %916 = vmatpush.bf16.msra.mxu1 %v1564_v13  ;;  %v1342_v41 = vld [vmem:[%s2223_s21 + $0x8] sm:$0xf]  ;;  %v1590_v44 = vld [vmem:[#allocation8 + $0xf0] sm:$0xff]  ;;  %v1589_v48 = vld [vmem:[#allocation8 + $0xe8] sm:$0xff] }
  0x59   : > { %930 = vmatpush.bf16.msra.mxu2 %v1572_v14  ;;  %v1598_v45 = vld [vmem:[#allocation8 + $0x130] sm:$0xff]  ;;  %v1343_v47 = vor.u32 %v1558_v42, %v1342_v41  ;;  %v1597_v49 = vld [vmem:[#allocation8 + $0x128] sm:$0xff]  ;;  %v1588_v51 = vld [vmem:[#allocation8 + $0xe0] sm:$0xff]  ;;  %p1940_p8 = pneg %p1939_p4 }
  0x5a   : > { %944 = vmatpush.bf16.msra.mxu3 %v1580_v15  ;;  %v1616_v46 = vld [vmem:[#allocation11 + $0x30] sm:$0xff]  ;;  %v1615_v50 = vld [vmem:[#allocation11 + $0x28] sm:$0xff]  ;;  %v1596_v52 = vld [vmem:[#allocation8 + $0x120] sm:$0xff] }
  0x5b   : > { %637 = vmatpush.bf16.msra.mxu0 %v1604_v16  ;;  %v1614_v53 = vld [vmem:[#allocation11 + $0x20] sm:$0xff]  ;;  %v1587_v54 = vld [vmem:[#allocation8 + $0xd8] sm:$0xff]  ;;  %v1586_v57 = vld [vmem:[#allocation8 + $0xd0] sm:$0xff] }
  0x5c   : > { %917 = vmatpush.bf16.msra.mxu1 %v1563_v17  ;;  %v1595_v55 = vld [vmem:[#allocation8 + $0x118] sm:$0xff]  ;;  %v1594_v58 = vld [vmem:[#allocation8 + $0x110] sm:$0xff]  ;;  %v1585_v60 = vld [vmem:[#allocation8 + $0xc8] sm:$0xff] }
  0x5d   : > { %931 = vmatpush.bf16.msra.mxu2 %v1571_v18  ;;  %v1613_v56 = vld [vmem:[#allocation11 + $0x18] sm:$0xff]  ;;  %v1612_v59 = vld [vmem:[#allocation11 + $0x10] sm:$0xff]  ;;  %v1593_v61 = vld [vmem:[#allocation8 + $0x108] sm:$0xff] }
  0x5e   : > { %945 = vmatpush.bf16.msra.mxu3 %v1579_v19  ;;  %v1611_v62 = vld [vmem:[#allocation11 + $0x8] sm:$0xff]  ;;  %v1584_v63 = vld [vmem:[#allocation8 + $0xc0] sm:$0xff]  ;;  %v1344_v2 = vld [vmem:[%s2223_s21 + $0x1c] sm:$0xf0] }
  0x5f   : > { %638 = vmatpush.bf16.msra.mxu0 %v1603_v20  ;;  %v1592_v0 = vld [vmem:[#allocation8 + $0x100] sm:$0xff]  ;;  %v1559_v5 = vld [vmem:[%s2223_s21 + $0x20] sm:$0xf0] }
  0x60   : > { %918 = vmatpush.bf16.msra.mxu1 %v1562_v21  ;;  %v1556_v1 = vld [vmem:[%s2223_s21 + $0xc] sm:$0xf]  ;;  %v1350_v4 = vld [vmem:[%s2223_s21 + $0x10] sm:$0xf]  ;;  %v1609_v8 = vld [vmem:[%s408_s14] sm:$0xff]  ;;  %s1941_s21 = scalar_lea.hbm %s2347_s19, 16 }
  0x61   : > { %932 = vmatpush.bf16.msra.mxu2 %v1570_v22  ;;  %v1610_v3 = vld [vmem:[#allocation11] sm:$0xff]  ;;  %v1347_v6 = vor.u32 %v1556_v1, %v1344_v2  ;;  %v1351_v7 = vor.u32 %v1559_v5, %v1350_v4  ;;  %p1943_p11 = scmp.lt.s32.totalorder %s1941_s21, %s1937_s27 }
  0x62   : > { %946 = vmatpush.bf16.msra.mxu3 %v1578_v23 }
  0x63   : > { %639 = vmatpush.bf16.msra.mxu0 %v1602_v24  ;;  %p1944_p12 = por %p1943_p11, %p1942_p10 }
  0x64   : > { %919 = vmatpush.bf16.msra.mxu1 %v1561_v25 }
  0x65   : > { %933 = vmatpush.bf16.msra.mxu2 %v1569_v26  ;;  %p1945_p13 = pnand %p1944_p12, %p1940_p8 }
  0x66   : > { %947 = vmatpush.bf16.msra.mxu3 %v1577_v27 }
  0x67   : > { %640 = vmatpush.bf16.msra.mxu0 %v1601_v28 }
  0x68   : > { %920 = vmatpush.bf16.msra.mxu1 %v1560_v29 }
  0x69   : > { %934 = vmatpush.bf16.msra.mxu2 %v1568_v30 }
  0x6a   : > { %948 = vmatpush.bf16.msra.mxu3 %v1576_v38  ;;  %641 = vmatmul.bf16.vlgmr.msra.gmra.mxu0 %v1600_v39 }
  0x6b   : > { %955 = vmatpush.bf16.msrb.mxu0 %v1591_v31  ;;  %921 = vmatmul.bf16.vlgmr.msra.gmra.mxu1 %v1335_v43  ;;  %v1736_v31 = vld [vmem:[%s473_s11] ss:$0 sm:$0xff] }
  0x6c   : > { %969 = vmatpush.bf16.msrb.mxu1 %v1599_v36  ;;  %935 = vmatmul.bf16.vlgmr.msra.gmra.mxu2 %v1339_v40 }
  0x6d   : > { %1055 = vmatpush.bf16.msrb.mxu2 %v1617_v37  ;;  %949 = vmatmul.bf16.vlgmr.msra.gmra.mxu3 %v1343_v47 }
  0x6f   : > { %956 = vmatpush.bf16.msrb.mxu0 %v1590_v44 }
  0x70   : > { %970 = vmatpush.bf16.msrb.mxu1 %v1598_v45 }
  0x71   : > { %1056 = vmatpush.bf16.msrb.mxu2 %v1616_v46 }
  0x73   : > { %957 = vmatpush.bf16.msrb.mxu0 %v1589_v48 }
  0x74   : > { %971 = vmatpush.bf16.msrb.mxu1 %v1597_v49 }
  0x75   : > { %1057 = vmatpush.bf16.msrb.mxu2 %v1615_v50 }
  0x77   : > { %958 = vmatpush.bf16.msrb.mxu0 %v1588_v51 }
  0x78   : > { %972 = vmatpush.bf16.msrb.mxu1 %v1596_v52 }
  0x79   : > { %1058 = vmatpush.bf16.msrb.mxu2 %v1614_v53 }
  0x7b   : > { %959 = vmatpush.bf16.msrb.mxu0 %v1587_v54 }
  0x7c   : > { %973 = vmatpush.bf16.msrb.mxu1 %v1595_v55 }
  0x7d   : > { %1059 = vmatpush.bf16.msrb.mxu2 %v1613_v56 }
  0x7f   : > { %960 = vmatpush.bf16.msrb.mxu0 %v1586_v57 }
  0x80   : > { %974 = vmatpush.bf16.msrb.mxu1 %v1594_v58 }
  0x81   : > { %1060 = vmatpush.bf16.msrb.mxu2 %v1612_v59 }
  0x83   : > { %961 = vmatpush.bf16.msrb.mxu0 %v1585_v60 }
  0x84   : > { %975 = vmatpush.bf16.msrb.mxu1 %v1593_v61 }
  0x85   : > { %1061 = vmatpush.bf16.msrb.mxu2 %v1611_v62 }
  0x87   : > { %962 = vmatpush.bf16.msrb.mxu0 %v1584_v63 }
  0x88   : > { %976 = vmatpush.bf16.msrb.mxu1 %v1592_v0 }
  0x89   : > { %1062 = vmatpush.bf16.msrb.mxu2 %v1610_v3 }
  0x8a   : > { %963 = vmatmul.bf16.vlgmr.msrb.gmra.mxu0 %v1347_v6 }
  0x8b   : > { %977 = vmatmul.bf16.vlgmr.msrb.gmra.mxu1 %v1351_v7 }
  0x8c   : > { %1063 = vmatmul.bf16.vlgmr.msrb.gmra.mxu2 %v1609_v8 }
  0xe7   : > { %v642_v9 = vpop.f32.mrf.mxu0 }
  0xe8   : > { %v922_v10 = vpop.f32.mrf.mxu1 }
  0xe9   : > { %v923_v13 = vadd.f32 %v922_v10, %v642_v9 }
  0xef   : > { %v936_v11 = vpop.f32.mrf.mxu2  ;;  %v644_v12 = vpop.f32.mrf.mxu0 }
  0xf0   : > { %v950_v14 = vpop.f32.mrf.mxu3  ;;  %v924_v15 = vpop.f32.mrf.mxu1  ;;  %v937_v16 = vadd.f32 %v936_v11, %v923_v13 }
  0xf1   : > { %v925_v18 = vadd.f32 %v924_v15, %v644_v12 }
  0xf2   : > { %v951_v20 = vadd.f32 %v950_v14, %v937_v16 }
  0xf7   : > { %v938_v17 = vpop.f32.mrf.mxu2 }
  0xf8   : > { %v939_v22 = vadd.f32 %v938_v17, %v925_v18  ;;  %v952_v23 = vpop.f32.mrf.mxu3 }
  0xfa   : > { %v953_v26 = vadd.f32 %v952_v23, %v939_v22 }
 0x107   : > { %v964_v19 = vpop.f32.mrf.mxu0 }
 0x108   : > { %v978_v21 = vpop.f32.mrf.mxu1  ;;  %v965_v24 = vadd.f32 %v964_v19, %v951_v20 }
 0x10a   : > { %v979_v28 = vadd.f32 %v978_v21, %v965_v24 }
 0x10f   : > { %v1064_v25 = vpop.f32.mrf.mxu2  ;;  %v966_v27 = vpop.f32.mrf.mxu0 }
 0x110   : > { %v967_v29 = vadd.f32 %v966_v27, %v953_v26  ;;  %v1069_v30 = vadd.f32 %v1064_v25, %v979_v28  ;;  %v980_v32 = vpop.f32.mrf.mxu1 }
 0x112   : > { %v981_v33 = vadd.f32 %v980_v32, %v967_v29  ;;  %v1075_v34 = vadd.f32 %v1736_v31, %v1069_v30 }
 0x114   : > { %1737 = vtanh.f32 %v1075_v34 }
 0x117   : > { %v1066_v35 = vpop.f32.mrf.mxu2 }
 0x118   : > { %v1070_v36 = vadd.f32 %v1066_v35, %v981_v33 }
 0x11a   : > { %v1076_v37 = vadd.f32 %v1736_v31, %v1070_v36  ;;  %v1738_v38 = vpop.eup %1737 }
 0x11c   : > { %1739 = vtanh.f32 %v1076_v37 }
 0x122   : > { %v1740_v39 = vpop.eup %1739 }
 0x123   : > { %v1622_v40 = vpack.c.bf16 %v1740_v39, %v1738_v38 }
 0x125   : > { %1623 = vst [vmem:[%s467_s13] sm:$0xff] %v1622_v40  }
 0x126   : > { %1948 = shalt.err (!%p1945_p13)
}
 0x127   : > { %s2024_s17 = smov 64   ;;  %s2025_s7 = smov 4  }
 0x128   : > { %1645 = dma.vmem_to_hbm [thread:$0]  (%p2146_p5), %s1099_s1, 128, %s1101_s23, %s1084_s16, %s2024_s17, %s2024_s17, %s2025_s7  }
 0x129 PF: > { %s2349_s24 = sld [smem:[#allocation19_spill]]  ;;  %p2351_p0 = scmp.ge.s32.totalorder %s2015_s29, 2 }
 0x12b   : > { %p1668_p3 = pnand %p2351_p0, %p2111_p6 }
 0x12d   : > { %p1669_p7 = pneg %p1668_p3 }
 0x12f   : > { %s1115_s30 = sand.u32 1, %s2349_s24  }
 0x130   : > { %s1116_s9 = scalar_lea.sflag [#allocation4], %s1115_s30 }
 0x131   : > { %1990 = dma.done.wait (%p1669_p7), %s1116_s9, 128  }
 0x132   : > { %1992 = vsyncadd (%p1669_p7), %s1116_s9, 4294967168  ;;  %s28_s29 = sadd.s32 1, %s2015_s29   ;;  %s2352_s22 = sld [smem:[#allocation20_spill]] }
 0x133   : > { %p25_p9 = scmp.ge.s32.totalorder %s28_s29, 4   ;;  %s2353_s26 = sld [smem:[#allocation24_spill]] }
 0x134   : > { %s2354_s11 = sld [smem:[#allocation22_spill]]  ;;  %s2355_s24 = smov %s1999_s25 }
 0x135   : > { %s2357_s27 = smov %s2011_s28 }
 0x136   :  { %27 = sbr.rel (!%p25_p9) target bundleno = 16 (0x10), region = 132 }
 0x138   : > { %s2356_s25 = smov %s2352_s22 }
 0x13a   : > { %s2358_s28 = smov %s2354_s11 }
 0x13b   :  { %1122 = vsyncpa [#allocation3], 1 }
 0x13c   :  { %1124 = vsyncpa [#allocation3 + $0x1], 1 }
 0x13d   :  { %1125 = vsyncpa [#allocation6], 1 }
 0x13e   :  { %1127 = vsyncpa [#allocation6 + $0x1], 1 }
 0x13f   :  { %1128 = vsyncpa [#allocation9], 1 }
 0x140   :  { %1129 = vsyncpa [#allocation12], 1 }
 0x141   :  { %1130 = vsyncpa [#allocation4], 1 }
 0x142   :  { %1132 = vsyncpa [#allocation4 + $0x1], 1 }

// kernel: tpu_custom_call.1
= control target key start
LH: loop header
LB: loop body
LE: loop exit
PB: predicated region body
PF: predicated region fallthrough
CT: control target
= control target key end

     0   :  { %s2305_s0 = inlined_call_operand.hbm [shape: bf16[2,16,640], index: 0, kind: input, shape index: {}]   ;;  %s2306_s1 = inlined_call_operand.hbm [shape: bf16[2,16,128], index: 1, kind: input, shape index: {}]   ;;  %s2307_s2 = inlined_call_operand.hbm [shape: bf16[2,16,128], index: 2, kind: input, shape index: {}]   ;;  %s2308_s3 = inlined_call_operand.hbm [shape: bf16[640,128], index: 3, kind: input, shape index: {}]   ;;  %s2309_s4 = inlined_call_operand.hbm [shape: bf16[128,128], index: 4, kind: input, shape index: {}]   ;;  %s2310_s5 = inlined_call_operand.hbm [shape: bf16[128,128], index: 5, kind: input, shape index: {}]   ;;  %s2311_s6 = inlined_call_operand.vmem [shape: f32[2,1,128], index: 6, kind: input, shape index: {}]   ;;  %s2312_s7 = inlined_call_operand.hbm [shape: bf16[2,16,128], index: 7, kind: output, shape index: {}]  }
   0x1   :  { %2324 = sst [smem:[#allocation25_spill]] %s2306_s1 }
   0x2   :  { %2325 = sst [smem:[#allocation26_spill]] %s2307_s2 }
   0x3   :  { %2326 = sst [smem:[#allocation27_spill]] %s2308_s3 }
   0x4   :  { %2327 = sst [smem:[#allocation28_spill]] %s2309_s4 }
   0x5   :  { %2328 = sst [smem:[#allocation29_spill]] %s2312_s7 }
   0x6   :  { %12 = vsyncpa [#allocation3], 0 }
   0x7   :  { %14 = vsyncpa [#allocation3 + $0x1], 0 }
   0x8   :  { %15 = vsyncpa [#allocation6], 0 }
   0x9   :  { %17 = vsyncpa [#allocation6 + $0x1], 0 }
   0xa   :  { %18 = vsyncpa [#allocation9], 0 }
   0xb   :  { %19 = vsyncpa [#allocation12], 0 }
   0xc   :  { %20 = vsyncpa [#allocation4], 0 }
   0xd   :  { %22 = vsyncpa [#allocation4 + $0x1], 0  ;;  %s2066_s24 = smov 0   ;;  %s2068_s25 = smov 0  }
   0xe   :  { %s2070_s26 = smov 0   ;;  %s2072_s27 = smov 0  }
   0xf   :  { %s2074_s28 = smov 0   ;;  %s2076_s29 = smov 0  }
  0x10 LB: > { %2329 = sst [smem:[#allocation19_spill]] %s1995_s24  ;;  %s2097_s30 = sadd.s32 4294967295, %s2015_s29   ;;  %s2015_s29 = sphi %s2076_s29, %s28_s29   ;;  %s2011_s28 = sphi %s2074_s28, %s2358_s28   ;;  %s2007_s27 = sphi %s2072_s27, %s2357_s27   ;;  %s2003_s26 = sphi %s2070_s26, %s2353_s26   ;;  %s1999_s25 = sphi %s2068_s25, %s2356_s25   ;;  %s1995_s24 = sphi %s2066_s24, %s2355_s24  }
  0x11   : > { %2330 = sst [smem:[#allocation20_spill]] %s2003_s26  ;;  %s1276_s8 = sadd.s32 4294967294, %s2015_s29  }
  0x12   : > { %p62_p0 = scmp.ne.s32.totalorder %s1999_s25, %s1995_s24  ;;  %p63_p1 = scmp.eq.s32.totalorder %s2097_s30, 0 }
  0x13   : > { %p233_p2 = scmp.eq.s32.totalorder %s2097_s30, 1  ;;  %p239_p3 = scmp.eq.s32.totalorder %s1276_s8, 1 }
  0x14   : > { %p2106_p4 = por %p63_p1, %p62_p0  ;;  %p1277_p5 = scmp.ge.s32.totalorder %s2015_s29, 1 }
  0x15   : > { %p2111_p6 = por %p239_p3, %p62_p0  ;;  %p246_p7 = scmp.lt.s32.totalorder %s2015_s29, 3 }
  0x16   : > { %s2334_s3 = sld [smem:[#allocation27_spill]]  ;;  %s2017_s15 = smov [#allocation8]  }
  0x17   : > { %s2332_s10 = scalar_select %p2111_p6, 1, 0 }
  0x18   : > { %p2119_p8 = pnand %p1277_p5, %p246_p7  ;;  %s259_s16 = sshll.u32 %s2017_s15, 4  ;;  %s260_s16 = int_to_ptr.vmem [resolvable:$true] %s259_s16 }
  0x19   : > { %2333 = sst [smem:[#allocation21_spill]] %s2332_s10  ;;  %s2313_s18 = smov 64  }
  0x1a   : > { %p1647_p9 = pneg %p2119_p8  ;;  %s2315_s19 = smov 4  }
  0x1b   : > { %s40_s20 = sadd.s32 1, %s2011_s28  ;;  %s49_s21 = sadd.s32 1, %s2003_s26 }
  0x1c   : > { %s257_s13 = sshll.u32 %s2334_s3, 4  ;;  %p2127_p10 = pnand %p1647_p9, %p63_p1  ;;  %s258_s13 = int_to_ptr.hbm [resolvable:$true] %s257_s13 }
  0x1d   : > { %p42_p12 = scmp.ge.s32.totalorder %s40_s20, 2  ;;  %p56_p13 = scmp.ne.s32.totalorder %s2003_s26, %s1999_s25 }
  0x1e   : > { %1650 = dma.hbm_to_vmem [thread:$0]  (!%p2127_p10), %s258_s13, 5120, %s260_s16, [#allocation9], %s2313_s18, %s2313_s18, %s2315_s19  }
  0x1f   : > { %p57_p0 = scmp.eq.s32.totalorder %s2015_s29, 0  ;;  %s2360_s20 = smov (%p42_p12, %s40_s20), 0 }
  0x20   : > { %2337 = sst [smem:[#allocation22_spill]] %s2360_s20  ;;  %p2146_p5 = por %p233_p2, %p56_p13 }
  0x21   : > { %p58_p3 = por %p57_p0, %p56_p13  ;;  %s44_s23 = ssub.s32 %s2011_s28, %s2360_s20 }
  0x22   : > { %s2338_s22 = scalar_select %p2146_p5, 1, 0 }
  0x23   : > { %p1674_p7 = scmp.lt.s32.totalorder %s2015_s29, 2  ;;  %p47_p9 = scmp.eq.s32.totalorder %s44_s23, 0 }
  0x24   : > { %2339 = sst [smem:[#allocation23_spill]] %s2338_s22  ;;  %s2154_s8 = sand.u32 1, %s2003_s26  }
  0x25   : > { %p2156_p11 = pnand %p1674_p7, %p58_p3  ;;  %s326_s12 = sand.u32 1, %s2015_s29  }
  0x26   : > { %s2162_s13 = scalar_select %p47_p9, %s2003_s26, %s49_s21  }
  0x27   : > { %s1283_s15 = sshll.u32 %s2154_s8, 3  ;;  %s1553_s16 = sshll.u32 %s2011_s28, 3 }
  0x28   : > { %2341 = sst [smem:[#allocation24_spill]] %s2162_s13  ;;  %s330_s10 = scalar_lea.vmem [#allocation5], %s1283_s15 }
  0x29   : > { %s2342_s1 = sld [smem:[#allocation25_spill]]  ;;  %s340_s23 = sshll.u32 %s330_s10, 4  ;;  %s341_s23 = int_to_ptr.vmem [resolvable:$true] %s340_s23 }
  0x2a   : > { %s2169_s24 = scalar_lea.sflag [#allocation6], %s326_s12  ;;  %s2343_s22 = smov 4  }
  0x2b   : > { %s2344_s7 = smov 64   ;;  %s2345_s2 = sld [smem:[#allocation26_spill]] }
  0x2c   : > { %s2346_s4 = sld [smem:[#allocation28_spill]]  ;;  %s1625_s19 = smul.u32 40, %s2011_s28 }
  0x2d   : > { %s2219_s17 = sand.u32 (!%p2119_p8), 1, %s1999_s25  }
  0x2f   : > { %s337_s3 = scalar_lea.hbm %s2342_s1, %s1553_s16 }
  0x30   : > { %s338_s20 = sshll.u32 %s337_s3, 4  ;;  %s354_s3 = scalar_lea.vmem [#allocation7], %s1283_s15  ;;  %s339_s20 = int_to_ptr.hbm [resolvable:$true] %s338_s20 }
  0x31   : > { %1663 = dma.hbm_to_vmem [thread:$0]  (!%p2156_p11), %s339_s20, 128, %s341_s23, %s2169_s24, %s2344_s7, %s2344_s7, %s2343_s22  }
  0x32   : > { %s361_s26 = scalar_lea.hbm %s2345_s2, %s1553_s16  ;;  %s364_s10 = sshll.u32 %s354_s3, 4  ;;  %s2182_s10 = int_to_ptr.vmem [resolvable:$true] %s364_s10 }
  0x33   : > { %s362_s18 = sshll.u32 %s361_s26, 4  ;;  %s271_s1 = sshll.u32 %s2346_s4, 4  ;;  %s2180_s18 = int_to_ptr.hbm [resolvable:$true] %s362_s18  ;;  %s272_s1 = int_to_ptr.hbm [resolvable:$true] %s271_s1 }
  0x34   : > { %s2020_s20 = smov [#allocation10]   ;;  %s285_s26 = sshll.u32 %s2310_s5, 4  ;;  %s286_s26 = int_to_ptr.hbm [resolvable:$true] %s285_s26 }
  0x35   : > { %s273_s23 = sshll.u32 %s2020_s20, 4  ;;  %s2021_s15 = smov [#allocation11]   ;;  %s274_s23 = int_to_ptr.vmem [resolvable:$true] %s273_s23 }
  0x36   : > { %1653 = dma.hbm_to_vmem [thread:$0]  (!%p2127_p10), %s272_s1, 1024, %s274_s23, [#allocation9], %s2344_s7, %s2344_s7, %s2343_s22  }
  0x37   : > { %s287_s21 = sshll.u32 %s2021_s15, 4  ;;  %s1624_s3 = smul.u32 40, %s2154_s8  ;;  %s288_s21 = int_to_ptr.vmem [resolvable:$true] %s287_s21 }
  0x38   : > { %1656 = dma.hbm_to_vmem [thread:$0]  (!%p2127_p10), %s286_s26, 1024, %s288_s21, [#allocation12], %s2344_s7, %s2344_s7, %s2343_s22  }
  0x39   : > { %s305_s12 = scalar_lea.vmem [#allocation2], %s1624_s3  ;;  %s313_s23 = scalar_lea.hbm %s2305_s0, %s1625_s19 }
  0x3a   : > { %s316_s20 = sshll.u32 %s305_s12, 4  ;;  %s314_s16 = sshll.u32 %s313_s23, 4  ;;  %s317_s20 = int_to_ptr.vmem [resolvable:$true] %s316_s20  ;;  %s315_s16 = int_to_ptr.hbm [resolvable:$true] %s314_s16 }
  0x3b   : > { %s302_s2 = scalar_lea.sflag [#allocation3], %s2154_s8  ;;  %s2022_s4 = smov 320  }
  0x3c   : > { %s2023_s15 = smov 20   ;;  %382 = sbr.rel (%p2119_p8) target bundleno = 297 (0x129), region = 48 }
  0x3d   : > { %1660 = dma.hbm_to_vmem [thread:$0]  (!%p2156_p11), %s315_s16, 640, %s317_s20, %s302_s2, %s2022_s4, %s2022_s4, %s2023_s15  }
  0x3e   : > { %1666 = dma.hbm_to_vmem [thread:$0]  (!%p2156_p11), %s2180_s18, 128, %s2182_s10, %s2169_s24, %s2344_s7, %s2344_s7, %s2343_s22  }
  0x3f   : > { %s1626_s26 = smul.u32 (!%p2119_p8), 40, %s2219_s17  ;;  %s385_s8 = scalar_lea.sflag (!%p2119_p8), [#allocation3], %s2219_s17 }
  0x41   : > { %s2223_s21 = scalar_lea.vmem [#allocation2], %s1626_s26 }
  0x42   : > { %1974 = dma.done.wait (%p2106_p4), %s385_s8, 640  }
  0x43   : > { %1976 = vsyncadd (%p2106_p4), %s385_s8, 4294966656  ;;  %s394_s2 = sand.u32 1, %s2097_s30   ;;  %s2231_s4 = sshll.u32 %s2219_s17, 3 }
  0x44   : > { %s395_s7 = scalar_lea.sflag [#allocation6], %s394_s2  ;;  %s398_s24 = scalar_lea.vmem [#allocation5], %s2231_s4 }
  0x45   : > { %1978 = dma.done.wait (%p2106_p4), %s395_s7, 256  }
  0x46   : > { %1980 = vsyncadd (%p2106_p4), %s395_s7, 4294967040  ;;  %s408_s14 = scalar_lea.vmem [#allocation7], %s2231_s4 }
  0x47   : > { %1982 = dma.done.wait (%p63_p1), [#allocation9], 6144  }
  0x48   : > { %1984 = vsyncadd (%p63_p1), [#allocation9], 4294961152 }
  0x49   : > { %1986 = dma.done.wait (%p63_p1), [#allocation12], 1024  }
  0x4a   : > { %1988 = vsyncadd (%p63_p1), [#allocation12], 4294966272  ;;  %v1608_v0 = vld [vmem:[#allocation10 + $0x38] sm:$0xff]  ;;  %v1607_v3 = vld [vmem:[#allocation10 + $0x30] sm:$0xff]  ;;  %p471_p1 = scmp.lt.s32.totalorder %s2007_s27, 1  ;;  %s1618_s18 = sshll.u32 %s2007_s27, 3 }
  0x4b   : > { %v1567_v1 = vld [vmem:[#allocation8 + $0x38] sm:$0xff]  ;;  %633 = vmatpush.bf16.msra.mxu0 %v1608_v0  ;;  %v1566_v4 = vld [vmem:[#allocation8 + $0x30] sm:$0xff]  ;;  %v1606_v8 = vld [vmem:[#allocation10 + $0x28] sm:$0xff]  ;;  %s2347_s19 = sld [smem:[#allocation29_spill]]  ;;  %s467_s13 = scalar_lea.vmem [#allocation13], %s2231_s4 }
  0x4c   : > { %v1575_v2 = vld [vmem:[#allocation8 + $0x78] sm:$0xff]  ;;  %913 = vmatpush.bf16.msra.mxu1 %v1567_v1  ;;  %v1574_v6 = vld [vmem:[#allocation8 + $0x70] sm:$0xff]  ;;  %v1565_v9 = vld [vmem:[#allocation8 + $0x28] sm:$0xff]  ;;  %s472_s30 = scalar_select %p471_p1, %s2007_s27, 1 }
  0x4d   : > { %v1583_v5 = vld [vmem:[#allocation8 + $0xb8] sm:$0xff]  ;;  %927 = vmatpush.bf16.msra.mxu2 %v1575_v2  ;;  %v1582_v7 = vld [vmem:[#allocation8 + $0xb0] sm:$0xff]  ;;  %v1573_v10 = vld [vmem:[#allocation8 + $0x68] sm:$0xff]  ;;  %s1098_s1 = sshll.u32 %s467_s13, 4  ;;  %s1084_s16 = scalar_lea.sflag [#allocation4], %s2219_s17  ;;  %s1099_s1 = int_to_ptr.vmem [resolvable:$true] %s1098_s1 }
  0x4e   : > { %941 = vmatpush.bf16.msra.mxu3 %v1583_v5  ;;  %v1581_v11 = vld [vmem:[#allocation8 + $0xa8] sm:$0xff]  ;;  %v1605_v12 = vld [vmem:[#allocation10 + $0x20] sm:$0xff]  ;;  %v1604_v16 = vld [vmem:[#allocation10 + $0x18] sm:$0xff]  ;;  %s473_s11 = scalar_lea.vmem %s2311_s6, %s472_s30 }
  0x4f   : > { %634 = vmatpush.bf16.msra.mxu0 %v1607_v3  ;;  %v1564_v13 = vld [vmem:[#allocation8 + $0x20] sm:$0xff]  ;;  %v1563_v17 = vld [vmem:[#allocation8 + $0x18] sm:$0xff]  ;;  %v1603_v20 = vld [vmem:[#allocation10 + $0x10] sm:$0xff] }
  0x50   : > { %914 = vmatpush.bf16.msra.mxu1 %v1566_v4  ;;  %v1572_v14 = vld [vmem:[#allocation8 + $0x60] sm:$0xff]  ;;  %v1571_v18 = vld [vmem:[#allocation8 + $0x58] sm:$0xff]  ;;  %v1562_v21 = vld [vmem:[#allocation8 + $0x10] sm:$0xff] }
  0x51   : > { %928 = vmatpush.bf16.msra.mxu2 %v1574_v6  ;;  %v1580_v15 = vld [vmem:[#allocation8 + $0xa0] sm:$0xff]  ;;  %v1579_v19 = vld [vmem:[#allocation8 + $0x98] sm:$0xff]  ;;  %v1570_v22 = vld [vmem:[#allocation8 + $0x50] sm:$0xff]  ;;  %s1097_s20 = scalar_lea.hbm %s2347_s19, %s1618_s18 }
  0x52   : > { %942 = vmatpush.bf16.msra.mxu3 %v1582_v7  ;;  %v1578_v23 = vld [vmem:[#allocation8 + $0x90] sm:$0xff]  ;;  %v1602_v24 = vld [vmem:[#allocation10 + $0x8] sm:$0xff]  ;;  %v1601_v28 = vld [vmem:[#allocation10] sm:$0xff]  ;;  %s1100_s23 = sshll.u32 %s1097_s20, 4  ;;  %s1101_s23 = int_to_ptr.hbm [resolvable:$true] %s1100_s23 }
  0x53   : > { %635 = vmatpush.bf16.msra.mxu0 %v1606_v8  ;;  %v1561_v25 = vld [vmem:[#allocation8 + $0x8] sm:$0xff]  ;;  %v1560_v29 = vld [vmem:[#allocation8] sm:$0xff]  ;;  %v1591_v31 = vld [vmem:[#allocation8 + $0xf8] sm:$0xff]  ;;  %s1935_s15 = sshra.s32 %s1101_s23, 4  ;;  %s1936_s15 = int_to_ptr.hbm [resolvable:$true] %s1935_s15 }
  0x54   : > { %915 = vmatpush.bf16.msra.mxu1 %v1565_v9  ;;  %v1569_v26 = vld [vmem:[#allocation8 + $0x48] sm:$0xff]  ;;  %v1568_v30 = vld [vmem:[#allocation8 + $0x40] sm:$0xff]  ;;  %v1555_v32 = vld [vmem:[%s2223_s21 + $0x4] sm:$0xf]  ;;  %s1937_s27 = scalar_lea.hbm %s1936_s15, 8  ;;  %p1942_p10 = scmp.lt.s32.totalorder %s1936_s15, %s2347_s19 }
  0x55   : > { %929 = vmatpush.bf16.msra.mxu2 %v1573_v10  ;;  %v1577_v27 = vld [vmem:[#allocation8 + $0x88] sm:$0xff]  ;;  %v1334_v34 = vld [vmem:[%s2223_s21] sm:$0xf]  ;;  %v1576_v38 = vld [vmem:[#allocation8 + $0x80] sm:$0xff]  ;;  %p1938_p2 = scmp.ne.s32.totalorder %s1936_s15, %s1937_s27 }
  0x56   : > { %943 = vmatpush.bf16.msra.mxu3 %v1581_v11  ;;  %v1336_v33 = vld [vmem:[%s2223_s21 + $0x14] sm:$0xf0]  ;;  %v1557_v35 = vld [vmem:[%s2223_s21 + $0x10] sm:$0xf0]  ;;  %v1599_v36 = vld [vmem:[#allocation8 + $0x138] sm:$0xff] }
  0x57   : > { %636 = vmatpush.bf16.msra.mxu0 %v1605_v12  ;;  %v1617_v37 = vld [vmem:[#allocation11 + $0x38] sm:$0xff]  ;;  %v1600_v39 = vld [vmem:[%s398_s24] sm:$0xff]  ;;  %v1339_v40 = vor.u32 %v1555_v32, %v1336_v33  ;;  %v1558_v42 = vld [vmem:[%s2223_s21 + $0x18] sm:$0xf0]  ;;  %v1335_v43 = vor.u32 %v1557_v35, %v1334_v34  ;;  %p1939_p4 = pnand %p1938_p2, %p2146_p5 }
  0x58   : > { %916 = vmatpush.bf16.msra.mxu1 %v1564_v13  ;;  %v1342_v41 = vld [vmem:[%s2223_s21 + $0x8] sm:$0xf]  ;;  %v1590_v44 = vld [vmem:[#allocation8 + $0xf0] sm:$0xff]  ;;  %v1589_v48 = vld [vmem:[#allocation8 + $0xe8] sm:$0xff] }
  0x59   : > { %930 = vmatpush.bf16.msra.mxu2 %v1572_v14  ;;  %v1598_v45 = vld [vmem:[#allocation8 + $0x130] sm:$0xff]  ;;  %v1343_v47 = vor.u32 %v1558_v42, %v1342_v41  ;;  %v1597_v49 = vld [vmem:[#allocation8 + $0x128] sm:$0xff]  ;;  %v1588_v51 = vld [vmem:[#allocation8 + $0xe0] sm:$0xff]  ;;  %p1940_p8 = pneg %p1939_p4 }
  0x5a   : > { %944 = vmatpush.bf16.msra.mxu3 %v1580_v15  ;;  %v1616_v46 = vld [vmem:[#allocation11 + $0x30] sm:$0xff]  ;;  %v1615_v50 = vld [vmem:[#allocation11 + $0x28] sm:$0xff]  ;;  %v1596_v52 = vld [vmem:[#allocation8 + $0x120] sm:$0xff] }
  0x5b   : > { %637 = vmatpush.bf16.msra.mxu0 %v1604_v16  ;;  %v1614_v53 = vld [vmem:[#allocation11 + $0x20] sm:$0xff]  ;;  %v1587_v54 = vld [vmem:[#allocation8 + $0xd8] sm:$0xff]  ;;  %v1586_v57 = vld [vmem:[#allocation8 + $0xd0] sm:$0xff] }
  0x5c   : > { %917 = vmatpush.bf16.msra.mxu1 %v1563_v17  ;;  %v1595_v55 = vld [vmem:[#allocation8 + $0x118] sm:$0xff]  ;;  %v1594_v58 = vld [vmem:[#allocation8 + $0x110] sm:$0xff]  ;;  %v1585_v60 = vld [vmem:[#allocation8 + $0xc8] sm:$0xff] }
  0x5d   : > { %931 = vmatpush.bf16.msra.mxu2 %v1571_v18  ;;  %v1613_v56 = vld [vmem:[#allocation11 + $0x18] sm:$0xff]  ;;  %v1612_v59 = vld [vmem:[#allocation11 + $0x10] sm:$0xff]  ;;  %v1593_v61 = vld [vmem:[#allocation8 + $0x108] sm:$0xff] }
  0x5e   : > { %945 = vmatpush.bf16.msra.mxu3 %v1579_v19  ;;  %v1611_v62 = vld [vmem:[#allocation11 + $0x8] sm:$0xff]  ;;  %v1584_v63 = vld [vmem:[#allocation8 + $0xc0] sm:$0xff]  ;;  %v1344_v2 = vld [vmem:[%s2223_s21 + $0x1c] sm:$0xf0] }
  0x5f   : > { %638 = vmatpush.bf16.msra.mxu0 %v1603_v20  ;;  %v1592_v0 = vld [vmem:[#allocation8 + $0x100] sm:$0xff]  ;;  %v1559_v5 = vld [vmem:[%s2223_s21 + $0x20] sm:$0xf0] }
  0x60   : > { %918 = vmatpush.bf16.msra.mxu1 %v1562_v21  ;;  %v1556_v1 = vld [vmem:[%s2223_s21 + $0xc] sm:$0xf]  ;;  %v1350_v4 = vld [vmem:[%s2223_s21 + $0x10] sm:$0xf]  ;;  %v1609_v8 = vld [vmem:[%s408_s14] sm:$0xff]  ;;  %s1941_s21 = scalar_lea.hbm %s2347_s19, 16 }
  0x61   : > { %932 = vmatpush.bf16.msra.mxu2 %v1570_v22  ;;  %v1610_v3 = vld [vmem:[#allocation11] sm:$0xff]  ;;  %v1347_v6 = vor.u32 %v1556_v1, %v1344_v2  ;;  %v1351_v7 = vor.u32 %v1559_v5, %v1350_v4  ;;  %p1943_p11 = scmp.lt.s32.totalorder %s1941_s21, %s1937_s27 }
  0x62   : > { %946 = vmatpush.bf16.msra.mxu3 %v1578_v23 }
  0x63   : > { %639 = vmatpush.bf16.msra.mxu0 %v1602_v24  ;;  %p1944_p12 = por %p1943_p11, %p1942_p10 }
  0x64   : > { %919 = vmatpush.bf16.msra.mxu1 %v1561_v25 }
  0x65   : > { %933 = vmatpush.bf16.msra.mxu2 %v1569_v26  ;;  %p1945_p13 = pnand %p1944_p12, %p1940_p8 }
  0x66   : > { %947 = vmatpush.bf16.msra.mxu3 %v1577_v27 }
  0x67   : > { %640 = vmatpush.bf16.msra.mxu0 %v1601_v28 }
  0x68   : > { %920 = vmatpush.bf16.msra.mxu1 %v1560_v29 }
  0x69   : > { %934 = vmatpush.bf16.msra.mxu2 %v1568_v30 }
  0x6a   : > { %948 = vmatpush.bf16.msra.mxu3 %v1576_v38  ;;  %641 = vmatmul.bf16.vlgmr.msra.gmra.mxu0 %v1600_v39 }
  0x6b   : > { %955 = vmatpush.bf16.msrb.mxu0 %v1591_v31  ;;  %921 = vmatmul.bf16.vlgmr.msra.gmra.mxu1 %v1335_v43  ;;  %v1736_v31 = vld [vmem:[%s473_s11] ss:$0 sm:$0xff] }
  0x6c   : > { %969 = vmatpush.bf16.msrb.mxu1 %v1599_v36  ;;  %935 = vmatmul.bf16.vlgmr.msra.gmra.mxu2 %v1339_v40 }
  0x6d   : > { %1055 = vmatpush.bf16.msrb.mxu2 %v1617_v37  ;;  %949 = vmatmul.bf16.vlgmr.msra.gmra.mxu3 %v1343_v47 }
  0x6f   : > { %956 = vmatpush.bf16.msrb.mxu0 %v1590_v44 }
  0x70   : > { %970 = vmatpush.bf16.msrb.mxu1 %v1598_v45 }
  0x71   : > { %1056 = vmatpush.bf16.msrb.mxu2 %v1616_v46 }
  0x73   : > { %957 = vmatpush.bf16.msrb.mxu0 %v1589_v48 }
  0x74   : > { %971 = vmatpush.bf16.msrb.mxu1 %v1597_v49 }
  0x75   : > { %1057 = vmatpush.bf16.msrb.mxu2 %v1615_v50 }
  0x77   : > { %958 = vmatpush.bf16.msrb.mxu0 %v1588_v51 }
  0x78   : > { %972 = vmatpush.bf16.msrb.mxu1 %v1596_v52 }
  0x79   : > { %1058 = vmatpush.bf16.msrb.mxu2 %v1614_v53 }
  0x7b   : > { %959 = vmatpush.bf16.msrb.mxu0 %v1587_v54 }
  0x7c   : > { %973 = vmatpush.bf16.msrb.mxu1 %v1595_v55 }
  0x7d   : > { %1059 = vmatpush.bf16.msrb.mxu2 %v1613_v56 }
  0x7f   : > { %960 = vmatpush.bf16.msrb.mxu0 %v1586_v57 }
  0x80   : > { %974 = vmatpush.bf16.msrb.mxu1 %v1594_v58 }
  0x81   : > { %1060 = vmatpush.bf16.msrb.mxu2 %v1612_v59 }
  0x83   : > { %961 = vmatpush.bf16.msrb.mxu0 %v1585_v60 }
  0x84   : > { %975 = vmatpush.bf16.msrb.mxu1 %v1593_v61 }
  0x85   : > { %1061 = vmatpush.bf16.msrb.mxu2 %v1611_v62 }
  0x87   : > { %962 = vmatpush.bf16.msrb.mxu0 %v1584_v63 }
  0x88   : > { %976 = vmatpush.bf16.msrb.mxu1 %v1592_v0 }
  0x89   : > { %1062 = vmatpush.bf16.msrb.mxu2 %v1610_v3 }
  0x8a   : > { %963 = vmatmul.bf16.vlgmr.msrb.gmra.mxu0 %v1347_v6 }
  0x8b   : > { %977 = vmatmul.bf16.vlgmr.msrb.gmra.mxu1 %v1351_v7 }
  0x8c   : > { %1063 = vmatmul.bf16.vlgmr.msrb.gmra.mxu2 %v1609_v8 }
  0xe7   : > { %v642_v9 = vpop.f32.mrf.mxu0 }
  0xe8   : > { %v922_v10 = vpop.f32.mrf.mxu1 }
  0xe9   : > { %v923_v13 = vadd.f32 %v922_v10, %v642_v9 }
  0xef   : > { %v936_v11 = vpop.f32.mrf.mxu2  ;;  %v644_v12 = vpop.f32.mrf.mxu0 }
  0xf0   : > { %v950_v14 = vpop.f32.mrf.mxu3  ;;  %v924_v15 = vpop.f32.mrf.mxu1  ;;  %v937_v16 = vadd.f32 %v936_v11, %v923_v13 }
  0xf1   : > { %v925_v18 = vadd.f32 %v924_v15, %v644_v12 }
  0xf2   : > { %v951_v20 = vadd.f32 %v950_v14, %v937_v16 }
  0xf7   : > { %v938_v17 = vpop.f32.mrf.mxu2 }
  0xf8   : > { %v939_v22 = vadd.f32 %v938_v17, %v925_v18  ;;  %v952_v23 = vpop.f32.mrf.mxu3 }
  0xfa   : > { %v953_v26 = vadd.f32 %v952_v23, %v939_v22 }
 0x107   : > { %v964_v19 = vpop.f32.mrf.mxu0 }
 0x108   : > { %v978_v21 = vpop.f32.mrf.mxu1  ;;  %v965_v24 = vadd.f32 %v964_v19, %v951_v20 }
 0x10a   : > { %v979_v28 = vadd.f32 %v978_v21, %v965_v24 }
 0x10f   : > { %v1064_v25 = vpop.f32.mrf.mxu2  ;;  %v966_v27 = vpop.f32.mrf.mxu0 }
 0x110   : > { %v967_v29 = vadd.f32 %v966_v27, %v953_v26  ;;  %v1069_v30 = vadd.f32 %v1064_v25, %v979_v28  ;;  %v980_v32 = vpop.f32.mrf.mxu1 }
 0x112   : > { %v981_v33 = vadd.f32 %v980_v32, %v967_v29  ;;  %v1075_v34 = vadd.f32 %v1736_v31, %v1069_v30 }
 0x114   : > { %1737 = vtanh.f32 %v1075_v34 }
 0x117   : > { %v1066_v35 = vpop.f32.mrf.mxu2 }
 0x118   : > { %v1070_v36 = vadd.f32 %v1066_v35, %v981_v33 }
 0x11a   : > { %v1076_v37 = vadd.f32 %v1736_v31, %v1070_v36  ;;  %v1738_v38 = vpop.eup %1737 }
 0x11c   : > { %1739 = vtanh.f32 %v1076_v37 }
 0x122   : > { %v1740_v39 = vpop.eup %1739 }
 0x123   : > { %v1622_v40 = vpack.c.bf16 %v1740_v39, %v1738_v38 }
 0x125   : > { %1623 = vst [vmem:[%s467_s13] sm:$0xff] %v1622_v40  }
 0x126   : > { %1948 = shalt.err (!%p1945_p13)
}
 0x127   : > { %s2024_s17 = smov 64   ;;  %s2025_s7 = smov 4  }
 0x128   : > { %1645 = dma.vmem_to_hbm [thread:$0]  (%p2146_p5), %s1099_s1, 128, %s1101_s23, %s1084_s16, %s2024_s17, %s2024_s17, %s2025_s7  }
 0x129 PF: > { %s2349_s24 = sld [smem:[#allocation19_spill]]  ;;  %p2351_p0 = scmp.ge.s32.totalorder %s2015_s29, 2 }
 0x12b   : > { %p1668_p3 = pnand %p2351_p0, %p2111_p6 }
 0x12d   : > { %p1669_p7 = pneg %p1668_p3 }
 0x12f   : > { %s1115_s30 = sand.u32 1, %s2349_s24  }
 0x130   : > { %s1116_s9 = scalar_lea.sflag [#allocation4], %s1115_s30 }
 0x131   : > { %1990 = dma.done.wait (%p1669_p7), %s1116_s9, 128  }
 0x132   : > { %1992 = vsyncadd (%p1669_p7), %s1116_s9, 4294967168  ;;  %s28_s29 = sadd.s32 1, %s2015_s29   ;;  %s2352_s22 = sld [smem:[#allocation20_spill]] }
 0x133   : > { %p25_p9 = scmp.ge.s32.totalorder %s28_s29, 4   ;;  %s2353_s26 = sld [smem:[#allocation24_spill]] }
 0x134   : > { %s2354_s11 = sld [smem:[#allocation22_spill]]  ;;  %s2355_s24 = smov %s1999_s25 }
 0x135   : > { %s2357_s27 = smov %s2011_s28 }
 0x136   :  { %27 = sbr.rel (!%p25_p9) target bundleno = 16 (0x10), region = 132 }
 0x138   : > { %s2356_s25 = smov %s2352_s22 }
 0x13a   : > { %s2358_s28 = smov %s2354_s11 }
 0x13b   :  { %1122 = vsyncpa [#allocation3], 1 }
 0x13c   :  { %1124 = vsyncpa [#allocation3 + $0x1], 1 }
 0x13d   :  { %1125 = vsyncpa [#allocation6], 1 }
 0x13e   :  { %1127 = vsyncpa [#allocation6 + $0x1], 1 }
 0x13f   :  { %1128 = vsyncpa [#allocation9], 1 }
 0x140   :  { %1129 = vsyncpa [#allocation12], 1 }
 0x141   :  { %1130 = vsyncpa [#allocation4], 1 }
 0x142   :  { %1132 = vsyncpa [#allocation4 + $0x1], 1 }

</bundles_post_ra>
